<compile_context>
chip_gen: v7x
topology: tpu7x:2x2x1
jax: 0.10.0
libtpu: 0.0.40
codegen_flags: <defaults>
</compile_context>

<pallas_src>
import functools
import math

import jax
import jax.numpy as jnp
from jax.experimental import pallas as pl
from jax.experimental.pallas import tpu as pltpu

_GELU_C = math.sqrt(2.0 / math.pi)


def _ffn_kernel(x_ref, w1_ref, w2_ref, o_ref, acc_ref):
    f = pl.program_id(1)

    @pl.when(f == 0)
    def _():
        acc_ref[...] = jnp.zeros_like(acc_ref)

    # First matmul on the MXU: bf16 (tm, Hp) @ (Hp, tf) -> f32 (tm, tf).
    h = jnp.dot(x_ref[...], w1_ref[...], preferred_element_type=jnp.float32)

    # tanh-approx GELU in f32 (tanh goes to the EUP; reuse h*h to trim VALU ops).
    h2 = h * h
    inner = _GELU_C * (h + 0.044715 * (h * h2))
    g = (0.5 * h) * (1.0 + jnp.tanh(inner))

    # Second matmul: accumulate bf16 (tm, tf) @ (tf, Hp) into the f32 scratch.
    acc_ref[...] += jnp.dot(g.astype(jnp.bfloat16), w2_ref[...],
                            preferred_element_type=jnp.float32)

    @pl.when(f == pl.num_programs(1) - 1)
    def _():
        o_ref[...] = acc_ref[...].astype(o_ref.dtype)


def _round_up(x, m):
    return ((x + m - 1) // m) * m


@functools.partial(jax.jit, static_argnames=("tm", "tf", "vmem_limit_bytes"))
def complex_ffn(x, w1, w2, *, tm=512, tf=512, vmem_limit_bytes=48 * 1024 * 1024):
    """x: (..., hidden) float32; w1: (hidden, ffn); w2: (ffn, hidden)."""
    hidden = x.shape[-1]
    ffn = w1.shape[1]
    assert w1.shape == (hidden, ffn) and w2.shape == (ffn, hidden)

    orig_shape = x.shape
    x2d = x.reshape(-1, hidden)          # (M, H) row-major flatten
    m = x2d.shape[0]

    # Lane-dense padding: hidden/ffn -> multiples of 128; rows -> multiple of tm.
    hp = _round_up(hidden, 128)
    fp = _round_up(ffn, 128)
    tm = min(tm, _round_up(m, 8))
    tm = _round_up(tm, 8)
    mp = _round_up(m, tm)
    tf = min(tf, fp)
    fp = _round_up(fp, tf)

    # bf16 MXU operands (accumulation stays f32 inside the kernel).
    x_p = jnp.zeros((mp, hp), jnp.bfloat16).at[:m, :hidden].set(
        x2d.astype(jnp.bfloat16))
    w1_p = jnp.zeros((hp, fp), jnp.bfloat16).at[:hidden, :ffn].set(
        w1.astype(jnp.bfloat16))
    w2_p = jnp.zeros((fp, hp), jnp.bfloat16).at[:ffn, :hidden].set(
        w2.astype(jnp.bfloat16))

    grid = (mp // tm, fp // tf)

    out = pl.pallas_call(
        _ffn_kernel,
        out_shape=jax.ShapeDtypeStruct((mp, hp), jnp.float32),
        grid_spec=pltpu.PrefetchScalarGridSpec(
            num_scalar_prefetch=0,
            grid=grid,
            in_specs=[
                pl.BlockSpec((tm, hp), lambda i, f: (i, 0)),   # X row tile (held across f)
                pl.BlockSpec((hp, tf), lambda i, f: (0, f)),   # W1 F-slice (streams)
                pl.BlockSpec((tf, hp), lambda i, f: (f, 0)),   # W2 F-slice (streams)
            ],
            out_specs=pl.BlockSpec((tm, hp), lambda i, f: (i, 0)),
            scratch_shapes=[pltpu.VMEM((tm, hp), jnp.float32)],
        ),
        compiler_params=pltpu.CompilerParams(
            dimension_semantics=("parallel", "arbitrary"),
            vmem_limit_bytes=vmem_limit_bytes),
    )(x_p, w1_p, w2_p)

    return out[:m, :hidden].reshape(orig_shape)


def _reference(x, w1, w2):
    h = x @ w1
    g = 0.5 * h * (1.0 + jnp.tanh(_GELU_C * (h + 0.044715 * h ** 3)))
    return g @ w2


def _rel_err(y, y_ref):
    return float(jnp.max(jnp.abs(y - y_ref)) / (jnp.max(jnp.abs(y_ref)) + 1e-8))


if __name__ == "__main__":
    # Small shapes implied by the module: (batch, seq, hidden) with an ffn dim.
    batch, seq, hidden, ffn = 2, 8, 32, 64
    key = jax.random.PRNGKey(0)
    kx, k1, k2 = jax.random.split(key, 3)

    # Deterministic parameter init mirroring torch.randn(...)/sqrt(fan_in).
    x = jax.random.normal(kx, (batch, seq, hidden), dtype=jnp.float32)
    w1 = jax.random.normal(k1, (hidden, ffn), dtype=jnp.float32) / math.sqrt(hidden)
    w2 = jax.random.normal(k2, (ffn, hidden), dtype=jnp.float32) / math.sqrt(ffn)

    y = complex_ffn(x, w1, w2)
    jax.block_until_ready(y)
    assert y.shape == (batch, seq, hidden)
    # bf16 MXU operands -> loosen tolerance vs the f32 reference.
    assert _rel_err(y, _reference(x, w1, w2)) < 5e-2

    # Slightly larger case that exercises both grid axes (row tiling + F
    # streaming/accumulation across multiple steps).
    b2, s2, h2, f2 = 4, 256, 256, 1024
    kx2, k12, k22 = jax.random.split(jax.random.PRNGKey(1), 3)
    x2 = jax.random.normal(kx2, (b2, s2, h2), dtype=jnp.float32)
    w1b = jax.random.normal(k12, (h2, f2), dtype=jnp.float32) / math.sqrt(h2)
    w2b = jax.random.normal(k22, (f2, h2), dtype=jnp.float32) / math.sqrt(f2)
    y2 = complex_ffn(x2, w1b, w2b)
    jax.block_until_ready(y2)
    assert y2.shape == (b2, s2, h2)
    assert _rel_err(y2, _reference(x2, w1b, w2b)) < 5e-2

    print("KERNEL_OK")
</pallas_src>

<mosaic_0001>
module attributes {stable_mosaic.version = 11 : i64} {
  func.func @_ffn_kernel(%arg0: i32, %arg1: i32, %arg2: memref<16x128xbf16, #tpu.memory_space<vmem>>, %arg3: memref<128x128xbf16, #tpu.memory_space<vmem>>, %arg4: memref<128x128xbf16, #tpu.memory_space<vmem>>, %arg5: memref<16x128xf32, #tpu.memory_space<vmem>>, %arg6: memref<16x128xf32, #tpu.memory_space<vmem>>) attributes {dimension_semantics = [#tpu.dimension_semantics<parallel>, #tpu.dimension_semantics<arbitrary>], iteration_bounds = array<i64: 1, 1>, scalar_prefetch = 0 : i64, scratch_operands = 1 : i64, tpu.core_type = #tpu.core_type<tc>, window_params = [{transform_indices = @transform_0, window_bounds = array<i64: 16, 128>}, {transform_indices = @transform_1, window_bounds = array<i64: 128, 128>}, {transform_indices = @transform_2, window_bounds = array<i64: 128, 128>}, {transform_indices = @transform_3, window_bounds = array<i64: 16, 128>}]} {
    %c0_i32 = arith.constant 0 : i32
    %0 = arith.cmpi eq, %arg1, %c0_i32 : i32
    %1 = arith.extui %0 : i1 to i32
    %c0_i32_0 = arith.constant 0 : i32
    %2 = arith.cmpi ne, %1, %c0_i32_0 : i32
    scf.if %2 {
      %cst_17 = arith.constant 0.000000e+00 : f32
      %28 = vector.broadcast %cst_17 : f32 to vector<16x128xf32>
      %c0_18 = arith.constant 0 : index
      %c0_19 = arith.constant 0 : index
      %29 = vector.load %arg6[%c0_18, %c0_19] : memref<16x128xf32, #tpu.memory_space<vmem>>, vector<16x128xf32>
      tpu.vector_store %arg6[%c0_18, %c0_19], %28 {strides = array<i32>} : memref<16x128xf32, #tpu.memory_space<vmem>>, vector<16x128xf32>,
    } else {
    }
    %c0 = arith.constant 0 : index
    %c0_1 = arith.constant 0 : index
    %3 = vector.load %arg2[%c0, %c0_1] : memref<16x128xbf16, #tpu.memory_space<vmem>>, vector<16x128xbf16>
    %c0_2 = arith.constant 0 : index
    %c0_3 = arith.constant 0 : index
    %4 = vector.load %arg3[%c0_2, %c0_3] : memref<128x128xbf16, #tpu.memory_space<vmem>>, vector<128x128xbf16>
    %cst = arith.constant dense<0.000000e+00> : vector<16x128xf32>
    %5 = tpu.matmul %3, %4, %cst {dimension_numbers = #tpu.dot_dimension_numbers<[1], [0], [0], [1], [0, 0, 1, 1], [], []>} : vector<16x128xbf16>, vector<128x128xbf16>, vector<16x128xf32> -> vector<16x128xf32>
    %6 = arith.mulf %5, %5 : vector<16x128xf32>
    %7 = arith.mulf %5, %6 : vector<16x128xf32>
    %cst_4 = arith.constant 4.471500e-02 : f32
    %8 = vector.broadcast %cst_4 : f32 to vector<16x128xf32>
    %9 = arith.mulf %8, %7 : vector<16x128xf32>
    %10 = arith.addf %5, %9 : vector<16x128xf32>
    %cst_5 = arith.constant 0.797884583 : f32
    %11 = vector.broadcast %cst_5 : f32 to vector<16x128xf32>
    %12 = arith.mulf %11, %10 : vector<16x128xf32>
    %cst_6 = arith.constant 5.000000e-01 : f32
    %13 = vector.broadcast %cst_6 : f32 to vector<16x128xf32>
    %14 = arith.mulf %13, %5 : vector<16x128xf32>
    %15 = math.tanh %12 : vector<16x128xf32>
    %cst_7 = arith.constant 1.000000e+00 : f32
    %16 = vector.broadcast %cst_7 : f32 to vector<16x128xf32>
    %17 = arith.addf %16, %15 : vector<16x128xf32>
    %18 = arith.mulf %14, %17 : vector<16x128xf32>
    %c0_8 = arith.constant 0 : index
    %c0_9 = arith.constant 0 : index
    %19 = vector.load %arg6[%c0_8, %c0_9] : memref<16x128xf32, #tpu.memory_space<vmem>>, vector<16x128xf32>
    %20 = arith.truncf %18 : vector<16x128xf32> to vector<16x128xbf16>
    %c0_10 = arith.constant 0 : index
    %c0_11 = arith.constant 0 : index
    %21 = vector.load %arg4[%c0_10, %c0_11] : memref<128x128xbf16, #tpu.memory_space<vmem>>, vector<128x128xbf16>
    %cst_12 = arith.constant dense<0.000000e+00> : vector<16x128xf32>
    %22 = tpu.matmul %20, %21, %cst_12 {dimension_numbers = #tpu.dot_dimension_numbers<[1], [0], [0], [1], [0, 0, 1, 1], [], []>} : vector<16x128xbf16>, vector<128x128xbf16>, vector<16x128xf32> -> vector<16x128xf32>
    %23 = arith.addf %19, %22 : vector<16x128xf32>
    %c0_13 = arith.constant 0 : index
    %c0_14 = arith.constant 0 : index
    %24 = vector.load %arg6[%c0_13, %c0_14] : memref<16x128xf32, #tpu.memory_space<vmem>>, vector<16x128xf32>
    tpu.vector_store %arg6[%c0_13, %c0_14], %23 {strides = array<i32>} : memref<16x128xf32, #tpu.memory_space<vmem>>, vector<16x128xf32>,
    %c0_i32_15 = arith.constant 0 : i32
    %25 = arith.cmpi eq, %arg1, %c0_i32_15 : i32
    %26 = arith.extui %25 : i1 to i32
    %c0_i32_16 = arith.constant 0 : i32
    %27 = arith.cmpi ne, %26, %c0_i32_16 : i32
    scf.if %27 {
      %c0_17 = arith.constant 0 : index
      %c0_18 = arith.constant 0 : index
      %28 = vector.load %arg6[%c0_17, %c0_18] : memref<16x128xf32, #tpu.memory_space<vmem>>, vector<16x128xf32>
      %c0_19 = arith.constant 0 : index
      %c0_20 = arith.constant 0 : index
      %29 = vector.load %arg5[%c0_19, %c0_20] : memref<16x128xf32, #tpu.memory_space<vmem>>, vector<16x128xf32>
      tpu.vector_store %arg5[%c0_19, %c0_20], %28 {strides = array<i32>} : memref<16x128xf32, #tpu.memory_space<vmem>>, vector<16x128xf32>,
    } else {
    }
    return
  }
  func.func @transform_0(%arg0: i32, %arg1: i32) -> (i32, i32) {
    %c0_i32 = arith.constant 0 : i32
    %c0_i32_0 = arith.constant 0 : i32
    return %arg0, %c0_i32 : i32, i32
  }
  func.func @transform_1(%arg0: i32, %arg1: i32) -> (i32, i32) {
    %c0_i32 = arith.constant 0 : i32
    %c0_i32_0 = arith.constant 0 : i32
    return %c0_i32, %arg1 : i32, i32
  }
  func.func @transform_2(%arg0: i32, %arg1: i32) -> (i32, i32) {
    %c0_i32 = arith.constant 0 : i32
    %c0_i32_0 = arith.constant 0 : i32
    return %arg1, %c0_i32 : i32, i32
  }
  func.func @transform_3(%arg0: i32, %arg1: i32) -> (i32, i32) {
    %c0_i32 = arith.constant 0 : i32
    %c0_i32_0 = arith.constant 0 : i32
    return %arg0, %c0_i32 : i32, i32
  }
}

</mosaic_0001>

<bundles_post_ra>
// kernel: complex_ffn.1
= control target key start
LH: loop header
LB: loop body
LE: loop exit
PB: predicated region body
PF: predicated region fallthrough
CT: control target
= control target key end

     0   :  { %v373_v0 = vmov 0.0   ;;  %vm374_vm0 = vmmov 0   ;;  %s452_s1 = inlined_call_operand.vmem [shape: bf16[128,128], index: 1, kind: input, shape index: {}]   ;;  %s453_s2 = inlined_call_operand.vmem [shape: bf16[128,128], index: 2, kind: input, shape index: {}]   ;;  %s454_s0 = inlined_call_operand.vmem [shape: bf16[16,128], index: 0, kind: input, shape index: {}]   ;;  %s455_s3 = inlined_call_operand.vmem [shape: f32[16,128], index: 3, kind: output, shape index: {}]  }
   0x1   :  { %310 = vmatprep.subr.bf16.mxu0 %v373_v0  ;;  %v352_v1 = vld [vmem:[%s452_s1] sm:$0xff]   ;;  %326 = vmatprep.mubr.msk.bf16.mxu0 %vm374_vm0, %v373_v0  ;;  %v353_v2 = vld [vmem:[%s452_s1 + $0x8] sm:$0xff]   ;;  %v354_v3 = vld [vmem:[%s452_s1 + $0x10] sm:$0xff]  }
   0x2   :  { %330 = vmatprep.subr.bf16.mxu1 %v373_v0  ;;  %346 = vmatprep.mubr.msk.bf16.mxu1 %vm374_vm0, %v373_v0  ;;  %v355_v4 = vld [vmem:[%s452_s1 + $0x18] sm:$0xff]   ;;  %v361_v5 = vld [vmem:[%s453_s2] sm:$0xff]   ;;  %v357_v7 = vld [vmem:[%s452_s1 + $0x28] sm:$0xff]  }
   0x3   :  { %311 = vmatpush3.bf16.msra.mxu0 %v352_v1  ;;  %331 = vmatpush3.bf16.msra.mxu1 %v361_v5  ;;  %v356_v6 = vld [vmem:[%s452_s1 + $0x20] sm:$0xff]   ;;  %v358_v8 = vld [vmem:[%s452_s1 + $0x30] sm:$0xff]   ;;  %v359_v9 = vld [vmem:[%s452_s1 + $0x38] sm:$0xff]  }
   0x4   :  { %312 = vmatprep.subr.bf16.mxu0 %v373_v0  ;;  %332 = vmatprep.subr.bf16.mxu1 %v373_v0  ;;  %v360_v10 = vld [vmem:[%s454_s0] sm:$0xff]   ;;  %v362_v11 = vld [vmem:[%s453_s2 + $0x8] sm:$0xff]   ;;  %v363_v12 = vld [vmem:[%s453_s2 + $0x10] sm:$0xff]  }
   0x5   :  { %v364_v13 = vld [vmem:[%s453_s2 + $0x18] sm:$0xff]   ;;  %v365_v14 = vld [vmem:[%s453_s2 + $0x20] sm:$0xff]   ;;  %v366_v15 = vld [vmem:[%s453_s2 + $0x28] sm:$0xff]  }
   0x6   :  { %v367_v16 = vld [vmem:[%s453_s2 + $0x30] sm:$0xff]   ;;  %v368_v17 = vld [vmem:[%s453_s2 + $0x38] sm:$0xff]  }
   0x7   :  { %313 = vmatpush3.bf16.msra.mxu0 %v353_v2  ;;  %333 = vmatpush3.bf16.msra.mxu1 %v362_v11 }
   0x8   :  { %314 = vmatprep.subr.bf16.mxu0 %v373_v0  ;;  %334 = vmatprep.subr.bf16.mxu1 %v373_v0 }
   0xb   :  { %315 = vmatpush3.bf16.msra.mxu0 %v354_v3  ;;  %335 = vmatpush3.bf16.msra.mxu1 %v363_v12 }
   0xc   :  { %316 = vmatprep.subr.bf16.mxu0 %v373_v0  ;;  %336 = vmatprep.subr.bf16.mxu1 %v373_v0 }
   0xf   :  { %317 = vmatpush3.bf16.msra.mxu0 %v355_v4  ;;  %337 = vmatpush3.bf16.msra.mxu1 %v364_v13 }
  0x10   :  { %318 = vmatprep.subr.bf16.mxu0 %v373_v0  ;;  %338 = vmatprep.subr.bf16.mxu1 %v373_v0 }
  0x13   :  { %319 = vmatpush3.bf16.msra.mxu0 %v356_v6  ;;  %339 = vmatpush3.bf16.msra.mxu1 %v365_v14 }
  0x14   :  { %320 = vmatprep.subr.bf16.mxu0 %v373_v0  ;;  %340 = vmatprep.subr.bf16.mxu1 %v373_v0 }
  0x17   :  { %321 = vmatpush3.bf16.msra.mxu0 %v357_v7  ;;  %341 = vmatpush3.bf16.msra.mxu1 %v366_v15 }
  0x18   :  { %322 = vmatprep.subr.bf16.mxu0 %v373_v0  ;;  %342 = vmatprep.subr.bf16.mxu1 %v373_v0 }
  0x1b   :  { %323 = vmatpush3.bf16.msra.mxu0 %v358_v8  ;;  %343 = vmatpush3.bf16.msra.mxu1 %v367_v16 }
  0x1c   :  { %324 = vmatprep.subr.bf16.mxu0 %v373_v0  ;;  %344 = vmatprep.subr.bf16.mxu1 %v373_v0 }
  0x1f   :  { %325 = vmatpush3.bf16.msra.mxu0 %v359_v9  ;;  %345 = vmatpush3.bf16.msra.mxu1 %v368_v17 }
  0x22   :  { %327 = vmatmul.mubr.bf16.vlgmr.msra.gmra.mrb[0].mxu0 %v360_v10 }
  0xf5   :  { %v127_v18 = vpop.f32.mrb[0].mxu0 }
  0xf6   :  { %v134_v19 = vmul.f32 %v127_v18, %v127_v18  ;;  %v328_v20 = vpop.f32.mrb[1].mxu0  ;;  %v144_v35 = vmul.f32 0.5, %v127_v18 }
  0xf7   :  { %v130_v21 = vpop.f32.mrb[2].mxu0 }
  0xf8   :  { %v136_v22 = vmul.f32 %v134_v19, %v127_v18  ;;  %v135_v23 = vmul.f32 %v130_v21, %v130_v21  ;;  %v329_v24 = vpop.f32.mrb[3].mxu0  ;;  %v145_v36 = vmul.f32 0.5, %v130_v21 }
  0xfa   :  { %v138_v25 = vmul.f32 0.044715, %v136_v22  ;;  %v137_v26 = vmul.f32 %v135_v23, %v130_v21 }
  0xfc   :  { %v140_v27 = vadd.f32 %v138_v25, %v127_v18  ;;  %v139_v28 = vmul.f32 0.044715, %v137_v26 }
  0xfe   :  { %v142_v29 = vmul.f32 0.7978846, %v140_v27  ;;  %v141_v30 = vadd.f32 %v139_v28, %v130_v21 }
 0x100   :  { %369 = vtanh.f32 %v142_v29  ;;  %v143_v31 = vmul.f32 0.7978846, %v141_v30 }
 0x102   :  { %371 = vtanh.f32 %v143_v31 }
 0x10a   :  { %v370_v32 = vpop.eup %369 }
 0x10b   :  { %v148_v33 = vadd.f32 1.0, %v370_v32 }
 0x10c   :  { %v372_v34 = vpop.eup %371 }
 0x10d   :  { %v149_v37 = vadd.f32 1.0, %v372_v34  ;;  %v150_v38 = vmul.f32 %v148_v33, %v144_v35 }
 0x10f   :  { %v151_v39 = vmul.f32 %v149_v37, %v145_v36 }
 0x111   :  { %v154_v40 = vpack.c.bf16 %v151_v39, %v150_v38 }
 0x113   :  { %347 = vmatmul.mubr.bf16.vlgmr.msra.gmra.mrb[0].mxu1 %v154_v40 }
 0x1e6   :  { %v253_v41 = vpop.f32.mrb[0].mxu1 }
 0x1e7   :  { %269 = vst [vmem:[%s455_s3] sm:$0xff] %v253_v41  ;;  %v348_v42 = vpop.f32.mrb[1].mxu1 }
 0x1e8   :  { %v256_v43 = vpop.f32.mrb[2].mxu1 }
 0x1e9   :  { %270 = vst [vmem:[%s455_s3 + $0x8] sm:$0xff] %v256_v43  ;;  %v349_v44 = vpop.f32.mrb[3].mxu1 }

</bundles_post_ra>
